<compile_context>
chip_gen: v6e
topology: v6e:2x2x1
jax: 0.10.0
libtpu: 0.0.40
codegen_flags: <defaults>
</compile_context>

<pallas_src>
import jax
import jax.numpy as jnp
from jax.experimental import pallas as pl
from jax.experimental.pallas import tpu as pltpu


def _tanh_kernel(x_ref, o_ref):
    # Compute in f32 (v5e has no bf16 VPU/EUP), single EUP tanh push,
    # fold the 1.1 scale into the same expression, cast back on store.
    xf = x_ref[...].astype(jnp.float32)
    o_ref[...] = (jnp.tanh(xf) * jnp.float32(1.1)).astype(o_ref.dtype)


def _choose_cols(n):
    """Pick a lane-dense column width (multiple of 128) that divides n if possible."""
    for c in (2048, 1024, 512, 256, 128):
        if n % c == 0:
            return c
    return 128  # general fallback; flat tail will be padded (< 512 B for f32)


def tanh_scaled(x, *, target_block_bytes=4 * 1024 * 1024):
    """Elementwise tanh(x) * 1.1 (== (e^x - e^-x)/(e^x + e^-x) * 1.1) via Pallas."""
    orig_shape = x.shape
    orig_dtype = x.dtype

    # Flatten to 1-D and view as a lane-dense (rows, cols) slab.
    x_flat = x.reshape(-1)
    n = x_flat.shape[0]
    cols = _choose_cols(n)

    pad = (-n) % cols
    if pad:
        # Only the flat tail is padded (< cols elements), not the whole array.
        x_flat = jnp.pad(x_flat, (0, pad))
    rows = (n + pad) // cols
    x2 = x_flat.reshape(rows, cols)

    itemsize = jnp.dtype(orig_dtype).itemsize
    # ~2-4 MiB blocks: big enough that the ~0.35us/step overhead vanishes,
    # small enough that double-buffered in+out fits v7x's smaller VMEM.
    tile_rows = max(16, target_block_bytes // (cols * itemsize))
    tile_rows = (tile_rows // 16) * 16  # keep sublane-friendly (also for bf16)
    if tile_rows >= rows:
        tile_rows = rows  # single block equal to full extent (always legal)

    grid = (pl.cdiv(rows, tile_rows),)

    out2 = pl.pallas_call(
        _tanh_kernel,
        out_shape=jax.ShapeDtypeStruct((rows, cols), orig_dtype),
        grid_spec=pltpu.PrefetchScalarGridSpec(
            num_scalar_prefetch=0,
            grid=grid,
            in_specs=[pl.BlockSpec((tile_rows, cols), lambda i: (i, 0))],
            out_specs=pl.BlockSpec((tile_rows, cols), lambda i: (i, 0)),
        ),
        compiler_params=pltpu.CompilerParams(
            dimension_semantics=("parallel",),
        ),
    )(x2)

    out_flat = out2.reshape(-1)
    if pad:
        out_flat = out_flat[:n]
    return out_flat.reshape(orig_shape)


if __name__ == "__main__":
    key = jax.random.PRNGKey(0)
    # Small NCHW input consistent with the module spec.
    x = jax.random.normal(key, (2, 4, 16, 16), dtype=jnp.float32)

    y = tanh_scaled(x)
    jax.block_until_ready(y)

    # Reference: the module's exact formula (well-behaved for these inputs).
    ref = (jnp.exp(x) - jnp.exp(-x)) / (jnp.exp(x) + jnp.exp(-x)) * 1.1
    assert y.shape == x.shape and y.dtype == x.dtype
    assert jnp.max(jnp.abs(y - ref)) < 1e-5

    print("KERNEL_OK")
</pallas_src>

<mosaic_0001>
module attributes {stable_mosaic.version = 11 : i64} {
  func.func @_tanh_kernel(%arg0: i32, %arg1: memref<1x2048xf32, #tpu.memory_space<vmem>>, %arg2: memref<1x2048xf32, #tpu.memory_space<vmem>>) attributes {dimension_semantics = [#tpu.dimension_semantics<parallel>], iteration_bounds = array<i64: 1>, scalar_prefetch = 0 : i64, scratch_operands = 0 : i64, tpu.core_type = #tpu.core_type<tc>, window_params = [{transform_indices = @transform_0, window_bounds = array<i64: 1, 2048>}, {transform_indices = @transform_1, window_bounds = array<i64: 1, 2048>}]} {
    %c0 = arith.constant 0 : index
    %c0_0 = arith.constant 0 : index
    %0 = vector.load %arg1[%c0, %c0_0] : memref<1x2048xf32, #tpu.memory_space<vmem>>, vector<1x2048xf32>
    %1 = math.tanh %0 : vector<1x2048xf32>
    %cst = arith.constant 1.100000e+00 : f32
    %2 = vector.broadcast %cst : f32 to vector<1x2048xf32>
    %3 = arith.mulf %1, %2 : vector<1x2048xf32>
    %c0_1 = arith.constant 0 : index
    %c0_2 = arith.constant 0 : index
    %4 = vector.load %arg2[%c0_1, %c0_2] : memref<1x2048xf32, #tpu.memory_space<vmem>>, vector<1x2048xf32>
    tpu.vector_store %arg2[%c0_1, %c0_2], %3 {strides = array<i32>} : memref<1x2048xf32, #tpu.memory_space<vmem>>, vector<1x2048xf32>,
    return
  }
  func.func @transform_0(%arg0: i32) -> (i32, i32) {
    %c0_i32 = arith.constant 0 : i32
    %c0_i32_0 = arith.constant 0 : i32
    return %arg0, %c0_i32 : i32, i32
  }
  func.func @transform_1(%arg0: i32) -> (i32, i32) {
    %c0_i32 = arith.constant 0 : i32
    %c0_i32_0 = arith.constant 0 : i32
    return %arg0, %c0_i32 : i32, i32
  }
}

</mosaic_0001>

<bundles_post_ra>
// kernel: tpu_custom_call.1
= control target key start
LH: loop header
LB: loop body
LE: loop exit
PB: predicated region body
PF: predicated region fallthrough
CT: control target
= control target key end

     0   :  { %6 = vsyncpa [#allocation3], 0  ;;  %s112_s0 = inlined_call_operand.hbm [shape: f32[1,2048], index: 0, kind: input, shape index: {}]   ;;  %s113_s1 = inlined_call_operand.hbm [shape: f32[1,2048], index: 1, kind: output, shape index: {}]  }
   0x1   :  { %7 = vsyncpa [#allocation4], 0  ;;  %s94_s6 = smov [#allocation2]  }
   0x2   :  { %s14_s7 = sshll.u32 %s94_s6, 4  ;;  %s15_s7 = int_to_ptr.vmem [resolvable:$true] %s14_s7 }
   0x3   :  { %s58_s8 = scalar_lea.vmem %s15_s7, 256  ;;  %p63_p1 = scmp.lt.s32.totalorder %s15_s7, %s15_s7 }
   0x4   :  { %p59_p0 = scmp.ne.s32.totalorder %s15_s7, %s58_s8  ;;  %p64_p2 = scmp.lt.s32.totalorder %s58_s8, %s58_s8 }
   0x6   :  { %p65_p3 = por %p64_p2, %p63_p1 }
   0x8   :  { %p66_p4 = pnand %p65_p3, %p59_p0 }
   0xa   :  { %69 = shalt.err (!%p66_p4)
}
   0xb   :  { %17 = dma.hbm_to_vmem [thread:$0]  %s112_s0, 256, %s15_s7, [#allocation3]  }
   0xc   :  { %90 = dma.done.wait [#allocation3], 256  }
   0xd   :  { %91 = vsyncadd [#allocation3], 4294967040  ;;  %v21_v0 = vld [vmem:[#allocation2] sm:$0xff]  ;;  %v22_v1 = vld [vmem:[#allocation2 + $0x8] sm:$0xff]  ;;  %s95_s11 = smov [#allocation5]  }
   0xe   :  { %46 = vtanh.f32 %v21_v0  ;;  %s35_s12 = sshll.u32 %s95_s11, 4  ;;  %s36_s12 = int_to_ptr.vmem [resolvable:$true] %s35_s12 }
   0xf   :  { %48 = vtanh.f32 %v22_v1  ;;  %s70_s13 = scalar_lea.vmem %s36_s12, 256  ;;  %p75_p6 = scmp.lt.s32.totalorder %s36_s12, %s36_s12 }
  0x10   :  { %p71_p5 = scmp.ne.s32.totalorder %s36_s12, %s70_s13  ;;  %p76_p7 = scmp.lt.s32.totalorder %s70_s13, %s70_s13 }
  0x12   :  { %p77_p8 = por %p76_p7, %p75_p6 }
  0x14   :  { %p78_p9 = pnand %p77_p8, %p71_p5 }
  0x1b   :  { %v47_v2 = vpop.eup %46 }
  0x1c   :  { %v49_v3 = vpop.eup %48  ;;  %v25_v4 = vmul.f32 1.1, %v47_v2 }
  0x1d   :  { %v26_v5 = vmul.f32 1.1, %v49_v3 }
  0x1e   :  { %27 = vst [vmem:[#allocation5] sm:$0xff] %v25_v4 }
  0x1f   :  { %28 = vst [vmem:[#allocation5 + $0x8] sm:$0xff] %v26_v5 }
  0x20   :  { %81 = shalt.err (!%p78_p9)
}
  0x21   :  { %38 = dma.vmem_to_hbm [thread:$0]  %s36_s12, 256, %s113_s1, [#allocation4]  }
  0x22   :  { %92 = dma.done.wait [#allocation4], 256  }
  0x23   :  { %93 = vsyncadd [#allocation4], 4294967040 }
  0x24   :  { %42 = vsyncpa [#allocation3], 1 }
  0x25   :  { %43 = vsyncpa [#allocation4], 1 }

</bundles_post_ra>
